<compile_context>
chip_gen: v7x
topology: tpu7x:2x2x1
jax: 0.10.0
libtpu: 0.0.40
codegen_flags: <defaults>
</compile_context>

<pallas_src>
import jax
import jax.numpy as jnp
from jax.experimental import pallas as pl
from jax.experimental.pallas import tpu as pltpu
import numpy as np


# --------------------------- parameter slab layout ---------------------------
def _align8(n):
    return ((n + 7) // 8) * 8


def _slab_layout(F_in, H, O, T_in, B_pad):
    """Row/col extents of every packed segment (weights + x + h0 + c0).

    Every segment starts at a sublane-aligned row (multiple of 8) so in-kernel
    slices are tile-aligned.  Lane width is padded to >=128 so the one-time
    weight loads are unmasked full-lane vlds.
    """
    segs = {}
    row = 0

    def add(name, r, c):
        nonlocal row
        segs[name] = (row, row + r, c)
        row = _align8(row + r)

    add("wie", F_in, 4 * H)        # encoder W_ih^T
    add("whe", H, 4 * H)           # encoder W_hh^T
    add("be", 1, 4 * H)            # encoder b_ih + b_hh
    add("wsm", H, 2 * O)           # [whm | wcm]   (fused state maps)
    add("bsm", 1, 2 * O)           # [bhm | bcm]
    add("wid", H, 4 * O)           # decoder W_ih^T
    add("whd", O, 4 * O)           # decoder W_hh^T
    add("bd", 1, 4 * O)            # decoder b_ih + b_hh
    add("h0", B_pad, H)            # initial encoder hidden (padded batch)
    add("c0", B_pad, H)            # initial encoder cell   (padded batch)
    add("x", T_in * B_pad, F_in)   # input sequence, time-major, padded batch
    total_rows = row
    total_cols = max(128, 4 * H, 2 * O, 4 * O, H, F_in)
    return segs, total_rows, total_cols


def _pack_slab(params, X_pad2d, h0_pad, c0_pad, layout, rows, cols):
    """Pack weights + activations into one pre-padded f32 slab (single DMA)."""
    wsm = jnp.concatenate([params["whm"], params["wcm"]], axis=1)   # (H, 2O)
    bsm = jnp.concatenate([params["bhm"], params["bcm"]], axis=1)   # (1, 2O)
    pieces = {
        "wie": params["wie"], "whe": params["whe"], "be": params["be"],
        "wsm": wsm, "bsm": bsm,
        "wid": params["wid"], "whd": params["whd"], "bd": params["bd"],
        "h0": h0_pad, "c0": c0_pad, "x": X_pad2d,
    }
    slab = jnp.zeros((rows, cols), jnp.float32)
    for name, arr in pieces.items():
        r0, r1, c = layout[name]
        slab = slab.at[r0:r1, :c].set(arr.astype(jnp.float32))
    return slab


# ----------------------------- Pallas kernel --------------------------------
def _make_kernel(layout, T_in, T_out, B_pad, F_in, H, O):
    def kernel(p_ref, pred_ref):
        # ---- hoist every segment into locals (loaded exactly once) ---------
        def seg(name):
            r0, r1, c = layout[name]
            return p_ref[r0:r1, 0:c]

        wie = seg("wie")    # (F_in, 4H)
        whe = seg("whe")    # (H,    4H)
        be = seg("be")      # (1,    4H)
        wsm = seg("wsm")    # (H,    2O)
        bsm = seg("bsm")    # (1,    2O)
        wid = seg("wid")    # (H,    4O)
        whd = seg("whd")    # (O,    4O)
        bd = seg("bd")      # (1,    4O)
        h0 = seg("h0")      # (B_pad, H)
        c0 = seg("c0")      # (B_pad, H)
        x2d = seg("x")      # (T_in*B_pad, F_in)

        def cell(gx, h, c, w_hh, hid):
            # gx already holds  x_t @ W_ih + (b_ih + b_hh)
            gates = gx + jnp.dot(h, w_hh, preferred_element_type=jnp.float32)
            # Whole-slab transcendentals: 2 EUP pushes instead of 4 per step.
            sig_all = jax.nn.sigmoid(gates)
            tanh_all = jnp.tanh(gates)
            i_g = sig_all[:, 0 * hid:1 * hid]
            f_g = sig_all[:, 1 * hid:2 * hid]
            g_g = tanh_all[:, 2 * hid:3 * hid]
            o_g = sig_all[:, 3 * hid:4 * hid]
            c_new = f_g * c + i_g * g_g
            h_new = o_g * jnp.tanh(c_new)
            return h_new, c_new

        # ---- encoder input-side gates for ALL timesteps in one matmul ------
        pre_enc = jnp.dot(x2d, wie,
                          preferred_element_type=jnp.float32) + be   # (T_in*B_pad, 4H)

        # ---- encoder recurrence (fully unrolled, static trip count) --------
        h = h0
        c = c0
        enc_tail = []                     # last T_out hidden outputs (in vregs)
        for t in range(T_in):
            h, c = cell(pre_enc[t * B_pad:(t + 1) * B_pad], h, c, whe, H)
            if t >= T_in - T_out:
                enc_tail.append(h)

        # ---- fused hidden/cell state maps: one matmul for both Linears -----
        # stack along sublanes: rows 0..B_pad-1 = h, rows B_pad..2*B_pad-1 = c
        hc = jnp.concatenate([h, c], axis=0)                        # (2*B_pad, H)
        sm = jnp.dot(hc, wsm, preferred_element_type=jnp.float32)   # (2*B_pad, 2O)
        hd = sm[0:B_pad, 0:O] + bsm[:, 0:O]
        cd = sm[B_pad:2 * B_pad, O:2 * O] + bsm[:, O:2 * O]

        # ---- decoder input-side gates for ALL timesteps in one matmul ------
        dec_in = jnp.concatenate(enc_tail, axis=0)                  # (T_out*B_pad, H)
        pre_dec = jnp.dot(dec_in, wid,
                          preferred_element_type=jnp.float32) + bd  # (T_out*B_pad, 4O)

        # ---- decoder recurrence (fully unrolled), single final store -------
        preds = []
        for t in range(T_out):
            hd, cd = cell(pre_dec[t * B_pad:(t + 1) * B_pad], hd, cd, whd, O)
            preds.append(hd)
        pred_ref[...] = jnp.concatenate(preds, axis=0)              # one store

    return kernel


# ------------------------------ wrapper --------------------------------------
def forecast_forward(params, X, h0, c0, inp_seq_len, out_seq_len):
    """Runs the ForecastModel forward pass (num_layers == 1)."""
    F_in = params["wie"].shape[0]
    H = params["whe"].shape[0]
    O = params["whm"].shape[1]

    batch_input = True
    if X.ndim == 2:
        batch_input = False
        X = X.reshape((inp_seq_len, -1, F_in))
    T_in, B, _ = X.shape
    assert out_seq_len <= T_in
    if h0.ndim == 1:
        h0 = h0.reshape(1, H)
    if c0.ndim == 1:
        c0 = c0.reshape(1, H)

    # ---- pad the batch (sublane) dimension to a multiple of 8 --------------
    B_pad = max(8, _align8(B))
    Xp = jnp.zeros((T_in, B_pad, F_in), jnp.float32)
    Xp = Xp.at[:, :B, :].set(X.astype(jnp.float32))
    x2d = Xp.reshape(T_in * B_pad, F_in)
    h0p = jnp.zeros((B_pad, H), jnp.float32).at[:B, :].set(h0.astype(jnp.float32))
    c0p = jnp.zeros((B_pad, H), jnp.float32).at[:B, :].set(c0.astype(jnp.float32))

    # ---- one slab = one HBM->VMEM DMA (weights + x + h0 + c0) --------------
    layout, rows, cols = _slab_layout(F_in, H, O, T_in, B_pad)
    slab = _pack_slab(params, x2d, h0p, c0p, layout, rows, cols)

    kernel = _make_kernel(layout, T_in, out_seq_len, B_pad, F_in, H, O)

    pred2d = pl.pallas_call(
        kernel,
        out_shape=jax.ShapeDtypeStruct((out_seq_len * B_pad, O), jnp.float32),
        in_specs=[pl.BlockSpec(memory_space=pltpu.MemorySpace.VMEM)],
        out_specs=pl.BlockSpec(memory_space=pltpu.MemorySpace.VMEM),
    )(slab)

    pred = pred2d.reshape(out_seq_len, B_pad, O)[:, :B, :]
    if not batch_input:
        pred = pred.reshape(out_seq_len, O)
    return pred


# -------------------------- pure-JAX reference --------------------------------
def forecast_reference(params, X, h0, c0, out_seq_len):
    def cell(x_t, h, c, w_ih_t, w_hh_t, b, hid):
        g = x_t @ w_ih_t + h @ w_hh_t + b
        i = jax.nn.sigmoid(g[:, 0 * hid:1 * hid])
        f = jax.nn.sigmoid(g[:, 1 * hid:2 * hid])
        gg = jnp.tanh(g[:, 2 * hid:3 * hid])
        o = jax.nn.sigmoid(g[:, 3 * hid:4 * hid])
        c_new = f * c + i * gg
        return o * jnp.tanh(c_new), c_new

    H = params["whe"].shape[0]
    O = params["whd"].shape[0]
    h, c = h0, c0
    enc_outs = []
    for t in range(X.shape[0]):
        h, c = cell(X[t], h, c, params["wie"], params["whe"], params["be"], H)
        enc_outs.append(h)
    enc_out = jnp.stack(enc_outs)
    hd = h @ params["whm"] + params["bhm"]
    cd = c @ params["wcm"] + params["bcm"]
    preds = []
    for t in range(out_seq_len):
        x_t = enc_out[X.shape[0] - out_seq_len + t]
        hd, cd = cell(x_t, hd, cd, params["wid"], params["whd"], params["bd"], O)
        preds.append(hd)
    return jnp.stack(preds)


# ------------------------------ main ------------------------------------------
if __name__ == "__main__":
    # Model hyper-parameters (small, consistent with the module).
    inp_features = ("count", "temp", "humidity", "wind")  # F_in = 4
    out_features = ("count", "temp")                       # O = 2
    F_in = len(inp_features)
    O = len(out_features)
    H = 16                  # hid_feature_count
    num_layers = 1
    inp_seq_len = 8
    out_seq_len = 4
    B = 2                   # batch

    key = jax.random.PRNGKey(0)
    ks = jax.random.split(key, 16)
    s = 0.1

    params = {
        # encoder LSTM (weights stored transposed: (in, 4H), gate order i,f,g,o)
        "wie": jax.random.normal(ks[0], (F_in, 4 * H), jnp.float32) * s,
        "whe": jax.random.normal(ks[1], (H, 4 * H), jnp.float32) * s,
        "be":  jax.random.normal(ks[2], (1, 4 * H), jnp.float32) * s,  # b_ih+b_hh
        # hidd_s_map / cell_s_map Linear(H*num_layers -> O*num_layers)
        "whm": jax.random.normal(ks[3], (H, O), jnp.float32) * s,
        "bhm": jax.random.normal(ks[4], (1, O), jnp.float32) * s,
        "wcm": jax.random.normal(ks[5], (H, O), jnp.float32) * s,
        "bcm": jax.random.normal(ks[6], (1, O), jnp.float32) * s,
        # decoder LSTM (input = H, hidden = O)
        "wid": jax.random.normal(ks[7], (H, 4 * O), jnp.float32) * s,
        "whd": jax.random.normal(ks[8], (O, 4 * O), jnp.float32) * s,
        "bd":  jax.random.normal(ks[9], (1, 4 * O), jnp.float32) * s,
    }

    # Input (time-major: seq, batch, features) + the torch.randn initial
    # encoder states, generated deterministically host-side.
    X = jax.random.normal(ks[10], (inp_seq_len, B, F_in), jnp.float32)
    h0 = jax.random.normal(ks[11], (B, H), jnp.float32)   # (num_layers=1, B, H) squeezed
    c0 = jax.random.normal(ks[12], (B, H), jnp.float32)

    pred = forecast_forward(params, X, h0, c0, inp_seq_len, out_seq_len)
    pred = jax.block_until_ready(pred)

    ref = forecast_reference(params, X, h0, c0, out_seq_len)
    assert pred.shape == (out_seq_len, B, O), pred.shape
    np.testing.assert_allclose(np.asarray(pred), np.asarray(ref),
                               rtol=2e-4, atol=2e-5)

    # TODO(synk): plot() is matplotlib visualization, not part of the forward
    # compute, so it is intentionally not translated.
    print("KERNEL_OK")
</pallas_src>

<mosaic_0001>
module attributes {stable_mosaic.version = 11 : i64} {
  func.func @kernel(%arg0: memref<168x128xf32, #tpu.memory_space<vmem>>, %arg1: memref<32x2xf32, #tpu.memory_space<vmem>>) attributes {dimension_semantics = [], scalar_prefetch = 0 : i64, scratch_operands = 0 : i64, tpu.core_type = #tpu.core_type<tc>} {
    %c0 = arith.constant 0 : index
    %c0_0 = arith.constant 0 : index
    %0 = vector.load %arg0[%c0, %c0_0] : memref<168x128xf32, #tpu.memory_space<vmem>>, vector<4x64xf32>
    %c8 = arith.constant 8 : index
    %c0_1 = arith.constant 0 : index
    %1 = vector.load %arg0[%c8, %c0_1] : memref<168x128xf32, #tpu.memory_space<vmem>>, vector<16x64xf32>
    %c24 = arith.constant 24 : index
    %c0_2 = arith.constant 0 : index
    %2 = vector.load %arg0[%c24, %c0_2] : memref<168x128xf32, #tpu.memory_space<vmem>>, vector<1x64xf32>
    %c32 = arith.constant 32 : index
    %c0_3 = arith.constant 0 : index
    %3 = vector.load %arg0[%c32, %c0_3] : memref<168x128xf32, #tpu.memory_space<vmem>>, vector<16x4xf32>
    %c48 = arith.constant 48 : index
    %c0_4 = arith.constant 0 : index
    %4 = vector.load %arg0[%c48, %c0_4] : memref<168x128xf32, #tpu.memory_space<vmem>>, vector<1x4xf32>
    %c56 = arith.constant 56 : index
    %c0_5 = arith.constant 0 : index
    %5 = vector.load %arg0[%c56, %c0_5] : memref<168x128xf32, #tpu.memory_space<vmem>>, vector<16x8xf32>
    %c72 = arith.constant 72 : index
    %c0_6 = arith.constant 0 : index
    %6 = vector.load %arg0[%c72, %c0_6] : memref<168x128xf32, #tpu.memory_space<vmem>>, vector<2x8xf32>
    %c80 = arith.constant 80 : index
    %c0_7 = arith.constant 0 : index
    %7 = vector.load %arg0[%c80, %c0_7] : memref<168x128xf32, #tpu.memory_space<vmem>>, vector<1x8xf32>
    %c88 = arith.constant 88 : index
    %c0_8 = arith.constant 0 : index
    %8 = vector.load %arg0[%c88, %c0_8] : memref<168x128xf32, #tpu.memory_space<vmem>>, vector<8x16xf32>
    %c96 = arith.constant 96 : index
    %c0_9 = arith.constant 0 : index
    %9 = vector.load %arg0[%c96, %c0_9] : memref<168x128xf32, #tpu.memory_space<vmem>>, vector<8x16xf32>
    %c104 = arith.constant 104 : index
    %c0_10 = arith.constant 0 : index
    %10 = vector.load %arg0[%c104, %c0_10] : memref<168x128xf32, #tpu.memory_space<vmem>>, vector<64x4xf32>
    %cst = arith.constant dense<0.000000e+00> : vector<64x64xf32>
    %11 = tpu.matmul %10, %0, %cst {dimension_numbers = #tpu.dot_dimension_numbers<[1], [0], [0], [1], [0, 0, 1, 1], [], []>} : vector<64x4xf32>, vector<4x64xf32>, vector<64x64xf32> -> vector<64x64xf32>
    %12 = vector.broadcast %2 : vector<1x64xf32> to vector<64x64xf32>
    %13 = arith.addf %11, %12 : vector<64x64xf32>
    %14 = vector.extract_strided_slice %13 {offsets = [0, 0], sizes = [8, 64], strides = [1, 1]} : vector<64x64xf32> to vector<8x64xf32>
    %cst_11 = arith.constant dense<0.000000e+00> : vector<8x64xf32>
    %15 = tpu.matmul %8, %1, %cst_11 {dimension_numbers = #tpu.dot_dimension_numbers<[1], [0], [0], [1], [0, 0, 1, 1], [], []>} : vector<8x16xf32>, vector<16x64xf32>, vector<8x64xf32> -> vector<8x64xf32>
    %16 = arith.addf %14, %15 : vector<8x64xf32>
    %17 = arith.negf %16 : vector<8x64xf32>
    %18 = math.exp %17 : vector<8x64xf32>
    %cst_12 = arith.constant 1.000000e+00 : f32
    %19 = vector.broadcast %cst_12 : f32 to vector<8x64xf32>
    %20 = arith.addf %19, %18 : vector<8x64xf32>
    %21 = arith.divf %19, %20 : vector<8x64xf32>
    %22 = math.tanh %16 : vector<8x64xf32>
    %23 = vector.extract_strided_slice %21 {offsets = [0, 0], sizes = [8, 16], strides = [1, 1]} : vector<8x64xf32> to vector<8x16xf32>
    %24 = vector.extract_strided_slice %21 {offsets = [0, 16], sizes = [8, 16], strides = [1, 1]} : vector<8x64xf32> to vector<8x16xf32>
    %25 = vector.extract_strided_slice %22 {offsets = [0, 32], sizes = [8, 16], strides = [1, 1]} : vector<8x64xf32> to vector<8x16xf32>
    %26 = vector.extract_strided_slice %21 {offsets = [0, 48], sizes = [8, 16], strides = [1, 1]} : vector<8x64xf32> to vector<8x16xf32>
    %27 = arith.mulf %24, %9 : vector<8x16xf32>
    %28 = arith.mulf %23, %25 : vector<8x16xf32>
    %29 = arith.addf %27, %28 : vector<8x16xf32>
    %30 = math.tanh %29 : vector<8x16xf32>
    %31 = arith.mulf %26, %30 : vector<8x16xf32>
    %32 = vector.extract_strided_slice %13 {offsets = [8, 0], sizes = [8, 64], strides = [1, 1]} : vector<64x64xf32> to vector<8x64xf32>
    %cst_13 = arith.constant dense<0.000000e+00> : vector<8x64xf32>
    %33 = tpu.matmul %31, %1, %cst_13 {dimension_numbers = #tpu.dot_dimension_numbers<[1], [0], [0], [1], [0, 0, 1, 1], [], []>} : vector<8x16xf32>, vector<16x64xf32>, vector<8x64xf32> -> vector<8x64xf32>
    %34 = arith.addf %32, %33 : vector<8x64xf32>
    %35 = arith.negf %34 : vector<8x64xf32>
    %36 = math.exp %35 : vector<8x64xf32>
    %cst_14 = arith.constant 1.000000e+00 : f32
    %37 = vector.broadcast %cst_14 : f32 to vector<8x64xf32>
    %38 = arith.addf %37, %36 : vector<8x64xf32>
    %39 = arith.divf %37, %38 : vector<8x64xf32>
    %40 = math.tanh %34 : vector<8x64xf32>
    %41 = vector.extract_strided_slice %39 {offsets = [0, 0], sizes = [8, 16], strides = [1, 1]} : vector<8x64xf32> to vector<8x16xf32>
    %42 = vector.extract_strided_slice %39 {offsets = [0, 16], sizes = [8, 16], strides = [1, 1]} : vector<8x64xf32> to vector<8x16xf32>
    %43 = vector.extract_strided_slice %40 {offsets = [0, 32], sizes = [8, 16], strides = [1, 1]} : vector<8x64xf32> to vector<8x16xf32>
    %44 = vector.extract_strided_slice %39 {offsets = [0, 48], sizes = [8, 16], strides = [1, 1]} : vector<8x64xf32> to vector<8x16xf32>
    %45 = arith.mulf %42, %29 : vector<8x16xf32>
    %46 = arith.mulf %41, %43 : vector<8x16xf32>
    %47 = arith.addf %45, %46 : vector<8x16xf32>
    %48 = math.tanh %47 : vector<8x16xf32>
    %49 = arith.mulf %44, %48 : vector<8x16xf32>
    %50 = vector.extract_strided_slice %13 {offsets = [16, 0], sizes = [8, 64], strides = [1, 1]} : vector<64x64xf32> to vector<8x64xf32>
    %cst_15 = arith.constant dense<0.000000e+00> : vector<8x64xf32>
    %51 = tpu.matmul %49, %1, %cst_15 {dimension_numbers = #tpu.dot_dimension_numbers<[1], [0], [0], [1], [0, 0, 1, 1], [], []>} : vector<8x16xf32>, vector<16x64xf32>, vector<8x64xf32> -> vector<8x64xf32>
    %52 = arith.addf %50, %51 : vector<8x64xf32>
    %53 = arith.negf %52 : vector<8x64xf32>
    %54 = math.exp %53 : vector<8x64xf32>
    %cst_16 = arith.constant 1.000000e+00 : f32
    %55 = vector.broadcast %cst_16 : f32 to vector<8x64xf32>
    %56 = arith.addf %55, %54 : vector<8x64xf32>
    %57 = arith.divf %55, %56 : vector<8x64xf32>
    %58 = math.tanh %52 : vector<8x64xf32>
    %59 = vector.extract_strided_slice %57 {offsets = [0, 0], sizes = [8, 16], strides = [1, 1]} : vector<8x64xf32> to vector<8x16xf32>
    %60 = vector.extract_strided_slice %57 {offsets = [0, 16], sizes = [8, 16], strides = [1, 1]} : vector<8x64xf32> to vector<8x16xf32>
    %61 = vector.extract_strided_slice %58 {offsets = [0, 32], sizes = [8, 16], strides = [1, 1]} : vector<8x64xf32> to vector<8x16xf32>
    %62 = vector.extract_strided_slice %57 {offsets = [0, 48], sizes = [8, 16], strides = [1, 1]} : vector<8x64xf32> to vector<8x16xf32>
    %63 = arith.mulf %60, %47 : vector<8x16xf32>
    %64 = arith.mulf %59, %61 : vector<8x16xf32>
    %65 = arith.addf %63, %64 : vector<8x16xf32>
    %66 = math.tanh %65 : vector<8x16xf32>
    %67 = arith.mulf %62, %66 : vector<8x16xf32>
    %68 = vector.extract_strided_slice %13 {offsets = [24, 0], sizes = [8, 64], strides = [1, 1]} : vector<64x64xf32> to vector<8x64xf32>
    %cst_17 = arith.constant dense<0.000000e+00> : vector<8x64xf32>
    %69 = tpu.matmul %67, %1, %cst_17 {dimension_numbers = #tpu.dot_dimension_numbers<[1], [0], [0], [1], [0, 0, 1, 1], [], []>} : vector<8x16xf32>, vector<16x64xf32>, vector<8x64xf32> -> vector<8x64xf32>
    %70 = arith.addf %68, %69 : vector<8x64xf32>
    %71 = arith.negf %70 : vector<8x64xf32>
    %72 = math.exp %71 : vector<8x64xf32>
    %cst_18 = arith.constant 1.000000e+00 : f32
    %73 = vector.broadcast %cst_18 : f32 to vector<8x64xf32>
    %74 = arith.addf %73, %72 : vector<8x64xf32>
    %75 = arith.divf %73, %74 : vector<8x64xf32>
    %76 = math.tanh %70 : vector<8x64xf32>
    %77 = vector.extract_strided_slice %75 {offsets = [0, 0], sizes = [8, 16], strides = [1, 1]} : vector<8x64xf32> to vector<8x16xf32>
    %78 = vector.extract_strided_slice %75 {offsets = [0, 16], sizes = [8, 16], strides = [1, 1]} : vector<8x64xf32> to vector<8x16xf32>
    %79 = vector.extract_strided_slice %76 {offsets = [0, 32], sizes = [8, 16], strides = [1, 1]} : vector<8x64xf32> to vector<8x16xf32>
    %80 = vector.extract_strided_slice %75 {offsets = [0, 48], sizes = [8, 16], strides = [1, 1]} : vector<8x64xf32> to vector<8x16xf32>
    %81 = arith.mulf %78, %65 : vector<8x16xf32>
    %82 = arith.mulf %77, %79 : vector<8x16xf32>
    %83 = arith.addf %81, %82 : vector<8x16xf32>
    %84 = math.tanh %83 : vector<8x16xf32>
    %85 = arith.mulf %80, %84 : vector<8x16xf32>
    %86 = vector.extract_strided_slice %13 {offsets = [32, 0], sizes = [8, 64], strides = [1, 1]} : vector<64x64xf32> to vector<8x64xf32>
    %cst_19 = arith.constant dense<0.000000e+00> : vector<8x64xf32>
    %87 = tpu.matmul %85, %1, %cst_19 {dimension_numbers = #tpu.dot_dimension_numbers<[1], [0], [0], [1], [0, 0, 1, 1], [], []>} : vector<8x16xf32>, vector<16x64xf32>, vector<8x64xf32> -> vector<8x64xf32>
    %88 = arith.addf %86, %87 : vector<8x64xf32>
    %89 = arith.negf %88 : vector<8x64xf32>
    %90 = math.exp %89 : vector<8x64xf32>
    %cst_20 = arith.constant 1.000000e+00 : f32
    %91 = vector.broadcast %cst_20 : f32 to vector<8x64xf32>
    %92 = arith.addf %91, %90 : vector<8x64xf32>
    %93 = arith.divf %91, %92 : vector<8x64xf32>
    %94 = math.tanh %88 : vector<8x64xf32>
    %95 = vector.extract_strided_slice %93 {offsets = [0, 0], sizes = [8, 16], strides = [1, 1]} : vector<8x64xf32> to vector<8x16xf32>
    %96 = vector.extract_strided_slice %93 {offsets = [0, 16], sizes = [8, 16], strides = [1, 1]} : vector<8x64xf32> to vector<8x16xf32>
    %97 = vector.extract_strided_slice %94 {offsets = [0, 32], sizes = [8, 16], strides = [1, 1]} : vector<8x64xf32> to vector<8x16xf32>
    %98 = vector.extract_strided_slice %93 {offsets = [0, 48], sizes = [8, 16], strides = [1, 1]} : vector<8x64xf32> to vector<8x16xf32>
    %99 = arith.mulf %96, %83 : vector<8x16xf32>
    %100 = arith.mulf %95, %97 : vector<8x16xf32>
    %101 = arith.addf %99, %100 : vector<8x16xf32>
    %102 = math.tanh %101 : vector<8x16xf32>
    %103 = arith.mulf %98, %102 : vector<8x16xf32>
    %104 = vector.extract_strided_slice %13 {offsets = [40, 0], sizes = [8, 64], strides = [1, 1]} : vector<64x64xf32> to vector<8x64xf32>
    %cst_21 = arith.constant dense<0.000000e+00> : vector<8x64xf32>
    %105 = tpu.matmul %103, %1, %cst_21 {dimension_numbers = #tpu.dot_dimension_numbers<[1], [0], [0], [1], [0, 0, 1, 1], [], []>} : vector<8x16xf32>, vector<16x64xf32>, vector<8x64xf32> -> vector<8x64xf32>
    %106 = arith.addf %104, %105 : vector<8x64xf32>
    %107 = arith.negf %106 : vector<8x64xf32>
    %108 = math.exp %107 : vector<8x64xf32>
    %cst_22 = arith.constant 1.000000e+00 : f32
    %109 = vector.broadcast %cst_22 : f32 to vector<8x64xf32>
    %110 = arith.addf %109, %108 : vector<8x64xf32>
    %111 = arith.divf %109, %110 : vector<8x64xf32>
    %112 = math.tanh %106 : vector<8x64xf32>
    %113 = vector.extract_strided_slice %111 {offsets = [0, 0], sizes = [8, 16], strides = [1, 1]} : vector<8x64xf32> to vector<8x16xf32>
    %114 = vector.extract_strided_slice %111 {offsets = [0, 16], sizes = [8, 16], strides = [1, 1]} : vector<8x64xf32> to vector<8x16xf32>
    %115 = vector.extract_strided_slice %112 {offsets = [0, 32], sizes = [8, 16], strides = [1, 1]} : vector<8x64xf32> to vector<8x16xf32>
    %116 = vector.extract_strided_slice %111 {offsets = [0, 48], sizes = [8, 16], strides = [1, 1]} : vector<8x64xf32> to vector<8x16xf32>
    %117 = arith.mulf %114, %101 : vector<8x16xf32>
    %118 = arith.mulf %113, %115 : vector<8x16xf32>
    %119 = arith.addf %117, %118 : vector<8x16xf32>
    %120 = math.tanh %119 : vector<8x16xf32>
    %121 = arith.mulf %116, %120 : vector<8x16xf32>
    %122 = vector.extract_strided_slice %13 {offsets = [48, 0], sizes = [8, 64], strides = [1, 1]} : vector<64x64xf32> to vector<8x64xf32>
    %cst_23 = arith.constant dense<0.000000e+00> : vector<8x64xf32>
    %123 = tpu.matmul %121, %1, %cst_23 {dimension_numbers = #tpu.dot_dimension_numbers<[1], [0], [0], [1], [0, 0, 1, 1], [], []>} : vector<8x16xf32>, vector<16x64xf32>, vector<8x64xf32> -> vector<8x64xf32>
    %124 = arith.addf %122, %123 : vector<8x64xf32>
    %125 = arith.negf %124 : vector<8x64xf32>
    %126 = math.exp %125 : vector<8x64xf32>
    %cst_24 = arith.constant 1.000000e+00 : f32
    %127 = vector.broadcast %cst_24 : f32 to vector<8x64xf32>
    %128 = arith.addf %127, %126 : vector<8x64xf32>
    %129 = arith.divf %127, %128 : vector<8x64xf32>
    %130 = math.tanh %124 : vector<8x64xf32>
    %131 = vector.extract_strided_slice %129 {offsets = [0, 0], sizes = [8, 16], strides = [1, 1]} : vector<8x64xf32> to vector<8x16xf32>
    %132 = vector.extract_strided_slice %129 {offsets = [0, 16], sizes = [8, 16], strides = [1, 1]} : vector<8x64xf32> to vector<8x16xf32>
    %133 = vector.extract_strided_slice %130 {offsets = [0, 32], sizes = [8, 16], strides = [1, 1]} : vector<8x64xf32> to vector<8x16xf32>
    %134 = vector.extract_strided_slice %129 {offsets = [0, 48], sizes = [8, 16], strides = [1, 1]} : vector<8x64xf32> to vector<8x16xf32>
    %135 = arith.mulf %132, %119 : vector<8x16xf32>
    %136 = arith.mulf %131, %133 : vector<8x16xf32>
    %137 = arith.addf %135, %136 : vector<8x16xf32>
    %138 = math.tanh %137 : vector<8x16xf32>
    %139 = arith.mulf %134, %138 : vector<8x16xf32>
    %140 = vector.extract_strided_slice %13 {offsets = [56, 0], sizes = [8, 64], strides = [1, 1]} : vector<64x64xf32> to vector<8x64xf32>
    %cst_25 = arith.constant dense<0.000000e+00> : vector<8x64xf32>
    %141 = tpu.matmul %139, %1, %cst_25 {dimension_numbers = #tpu.dot_dimension_numbers<[1], [0], [0], [1], [0, 0, 1, 1], [], []>} : vector<8x16xf32>, vector<16x64xf32>, vector<8x64xf32> -> vector<8x64xf32>
    %142 = arith.addf %140, %141 : vector<8x64xf32>
    %143 = arith.negf %142 : vector<8x64xf32>
    %144 = math.exp %143 : vector<8x64xf32>
    %cst_26 = arith.constant 1.000000e+00 : f32
    %145 = vector.broadcast %cst_26 : f32 to vector<8x64xf32>
    %146 = arith.addf %145, %144 : vector<8x64xf32>
    %147 = arith.divf %145, %146 : vector<8x64xf32>
    %148 = math.tanh %142 : vector<8x64xf32>
    %149 = vector.extract_strided_slice %147 {offsets = [0, 0], sizes = [8, 16], strides = [1, 1]} : vector<8x64xf32> to vector<8x16xf32>
    %150 = vector.extract_strided_slice %147 {offsets = [0, 16], sizes = [8, 16], strides = [1, 1]} : vector<8x64xf32> to vector<8x16xf32>
    %151 = vector.extract_strided_slice %148 {offsets = [0, 32], sizes = [8, 16], strides = [1, 1]} : vector<8x64xf32> to vector<8x16xf32>
    %152 = vector.extract_strided_slice %147 {offsets = [0, 48], sizes = [8, 16], strides = [1, 1]} : vector<8x64xf32> to vector<8x16xf32>
    %153 = arith.mulf %150, %137 : vector<8x16xf32>
    %154 = arith.mulf %149, %151 : vector<8x16xf32>
    %155 = arith.addf %153, %154 : vector<8x16xf32>
    %156 = math.tanh %155 : vector<8x16xf32>
    %157 = arith.mulf %152, %156 : vector<8x16xf32>
    %158 = tpu.concatenate %157, %155 in 0 : vector<8x16xf32>, vector<8x16xf32> -> vector<16x16xf32>
    %cst_27 = arith.constant dense<0.000000e+00> : vector<16x4xf32>
    %159 = tpu.matmul %158, %3, %cst_27 {dimension_numbers = #tpu.dot_dimension_numbers<[1], [0], [0], [1], [0, 0, 1, 1], [], []>} : vector<16x16xf32>, vector<16x4xf32>, vector<16x4xf32> -> vector<16x4xf32>
    %160 = vector.extract_strided_slice %159 {offsets = [0, 0], sizes = [8, 2], strides = [1, 1]} : vector<16x4xf32> to vector<8x2xf32>
    %161 = vector.extract_strided_slice %4 {offsets = [0, 0], sizes = [1, 2], strides = [1, 1]} : vector<1x4xf32> to vector<1x2xf32>
    %162 = vector.broadcast %161 : vector<1x2xf32> to vector<8x2xf32>
    %163 = arith.addf %160, %162 : vector<8x2xf32>
    %164 = vector.extract_strided_slice %159 {offsets = [8, 2], sizes = [8, 2], strides = [1, 1]} : vector<16x4xf32> to vector<8x2xf32>
    %165 = vector.extract_strided_slice %4 {offsets = [0, 2], sizes = [1, 2], strides = [1, 1]} : vector<1x4xf32> to vector<1x2xf32>
    %166 = vector.broadcast %165 : vector<1x2xf32> to vector<8x2xf32>
    %167 = arith.addf %164, %166 : vector<8x2xf32>
    %168 = tpu.concatenate %103, %121, %139, %157 in 0 : vector<8x16xf32>, vector<8x16xf32>, vector<8x16xf32>, vector<8x16xf32> -> vector<32x16xf32>
    %cst_28 = arith.constant dense<0.000000e+00> : vector<32x8xf32>
    %169 = tpu.matmul %168, %5, %cst_28 {dimension_numbers = #tpu.dot_dimension_numbers<[1], [0], [0], [1], [0, 0, 1, 1], [], []>} : vector<32x16xf32>, vector<16x8xf32>, vector<32x8xf32> -> vector<32x8xf32>
    %170 = vector.broadcast %7 : vector<1x8xf32> to vector<32x8xf32>
    %171 = arith.addf %169, %170 : vector<32x8xf32>
    %172 = vector.extract_strided_slice %171 {offsets = [0, 0], sizes = [8, 8], strides = [1, 1]} : vector<32x8xf32> to vector<8x8xf32>
    %cst_29 = arith.constant dense<0.000000e+00> : vector<8x8xf32>
    %173 = tpu.matmul %163, %6, %cst_29 {dimension_numbers = #tpu.dot_dimension_numbers<[1], [0], [0], [1], [0, 0, 1, 1], [], []>} : vector<8x2xf32>, vector<2x8xf32>, vector<8x8xf32> -> vector<8x8xf32>
    %174 = arith.addf %172, %173 : vector<8x8xf32>
    %175 = arith.negf %174 : vector<8x8xf32>
    %176 = math.exp %175 : vector<8x8xf32>
    %cst_30 = arith.constant 1.000000e+00 : f32
    %177 = vector.broadcast %cst_30 : f32 to vector<8x8xf32>
    %178 = arith.addf %177, %176 : vector<8x8xf32>
    %179 = arith.divf %177, %178 : vector<8x8xf32>
    %180 = math.tanh %174 : vector<8x8xf32>
    %181 = vector.extract_strided_slice %179 {offsets = [0, 0], sizes = [8, 2], strides = [1, 1]} : vector<8x8xf32> to vector<8x2xf32>
    %182 = vector.extract_strided_slice %179 {offsets = [0, 2], sizes = [8, 2], strides = [1, 1]} : vector<8x8xf32> to vector<8x2xf32>
    %183 = vector.extract_strided_slice %180 {offsets = [0, 4], sizes = [8, 2], strides = [1, 1]} : vector<8x8xf32> to vector<8x2xf32>
    %184 = vector.extract_strided_slice %179 {offsets = [0, 6], sizes = [8, 2], strides = [1, 1]} : vector<8x8xf32> to vector<8x2xf32>
    %185 = arith.mulf %182, %167 : vector<8x2xf32>
    %186 = arith.mulf %181, %183 : vector<8x2xf32>
    %187 = arith.addf %185, %186 : vector<8x2xf32>
    %188 = math.tanh %187 : vector<8x2xf32>
    %189 = arith.mulf %184, %188 : vector<8x2xf32>
    %190 = vector.extract_strided_slice %171 {offsets = [8, 0], sizes = [8, 8], strides = [1, 1]} : vector<32x8xf32> to vector<8x8xf32>
    %cst_31 = arith.constant dense<0.000000e+00> : vector<8x8xf32>
    %191 = tpu.matmul %189, %6, %cst_31 {dimension_numbers = #tpu.dot_dimension_numbers<[1], [0], [0], [1], [0, 0, 1, 1], [], []>} : vector<8x2xf32>, vector<2x8xf32>, vector<8x8xf32> -> vector<8x8xf32>
    %192 = arith.addf %190, %191 : vector<8x8xf32>
    %193 = arith.negf %192 : vector<8x8xf32>
    %194 = math.exp %193 : vector<8x8xf32>
    %cst_32 = arith.constant 1.000000e+00 : f32
    %195 = vector.broadcast %cst_32 : f32 to vector<8x8xf32>
    %196 = arith.addf %195, %194 : vector<8x8xf32>
    %197 = arith.divf %195, %196 : vector<8x8xf32>
    %198 = math.tanh %192 : vector<8x8xf32>
    %199 = vector.extract_strided_slice %197 {offsets = [0, 0], sizes = [8, 2], strides = [1, 1]} : vector<8x8xf32> to vector<8x2xf32>
    %200 = vector.extract_strided_slice %197 {offsets = [0, 2], sizes = [8, 2], strides = [1, 1]} : vector<8x8xf32> to vector<8x2xf32>
    %201 = vector.extract_strided_slice %198 {offsets = [0, 4], sizes = [8, 2], strides = [1, 1]} : vector<8x8xf32> to vector<8x2xf32>
    %202 = vector.extract_strided_slice %197 {offsets = [0, 6], sizes = [8, 2], strides = [1, 1]} : vector<8x8xf32> to vector<8x2xf32>
    %203 = arith.mulf %200, %187 : vector<8x2xf32>
    %204 = arith.mulf %199, %201 : vector<8x2xf32>
    %205 = arith.addf %203, %204 : vector<8x2xf32>
    %206 = math.tanh %205 : vector<8x2xf32>
    %207 = arith.mulf %202, %206 : vector<8x2xf32>
    %208 = vector.extract_strided_slice %171 {offsets = [16, 0], sizes = [8, 8], strides = [1, 1]} : vector<32x8xf32> to vector<8x8xf32>
    %cst_33 = arith.constant dense<0.000000e+00> : vector<8x8xf32>
    %209 = tpu.matmul %207, %6, %cst_33 {dimension_numbers = #tpu.dot_dimension_numbers<[1], [0], [0], [1], [0, 0, 1, 1], [], []>} : vector<8x2xf32>, vector<2x8xf32>, vector<8x8xf32> -> vector<8x8xf32>
    %210 = arith.addf %208, %209 : vector<8x8xf32>
    %211 = arith.negf %210 : vector<8x8xf32>
    %212 = math.exp %211 : vector<8x8xf32>
    %cst_34 = arith.constant 1.000000e+00 : f32
    %213 = vector.broadcast %cst_34 : f32 to vector<8x8xf32>
    %214 = arith.addf %213, %212 : vector<8x8xf32>
    %215 = arith.divf %213, %214 : vector<8x8xf32>
    %216 = math.tanh %210 : vector<8x8xf32>
    %217 = vector.extract_strided_slice %215 {offsets = [0, 0], sizes = [8, 2], strides = [1, 1]} : vector<8x8xf32> to vector<8x2xf32>
    %218 = vector.extract_strided_slice %215 {offsets = [0, 2], sizes = [8, 2], strides = [1, 1]} : vector<8x8xf32> to vector<8x2xf32>
    %219 = vector.extract_strided_slice %216 {offsets = [0, 4], sizes = [8, 2], strides = [1, 1]} : vector<8x8xf32> to vector<8x2xf32>
    %220 = vector.extract_strided_slice %215 {offsets = [0, 6], sizes = [8, 2], strides = [1, 1]} : vector<8x8xf32> to vector<8x2xf32>
    %221 = arith.mulf %218, %205 : vector<8x2xf32>
    %222 = arith.mulf %217, %219 : vector<8x2xf32>
    %223 = arith.addf %221, %222 : vector<8x2xf32>
    %224 = math.tanh %223 : vector<8x2xf32>
    %225 = arith.mulf %220, %224 : vector<8x2xf32>
    %226 = vector.extract_strided_slice %171 {offsets = [24, 0], sizes = [8, 8], strides = [1, 1]} : vector<32x8xf32> to vector<8x8xf32>
    %cst_35 = arith.constant dense<0.000000e+00> : vector<8x8xf32>
    %227 = tpu.matmul %225, %6, %cst_35 {dimension_numbers = #tpu.dot_dimension_numbers<[1], [0], [0], [1], [0, 0, 1, 1], [], []>} : vector<8x2xf32>, vector<2x8xf32>, vector<8x8xf32> -> vector<8x8xf32>
    %228 = arith.addf %226, %227 : vector<8x8xf32>
    %229 = arith.negf %228 : vector<8x8xf32>
    %230 = math.exp %229 : vector<8x8xf32>
    %cst_36 = arith.constant 1.000000e+00 : f32
    %231 = vector.broadcast %cst_36 : f32 to vector<8x8xf32>
    %232 = arith.addf %231, %230 : vector<8x8xf32>
    %233 = arith.divf %231, %232 : vector<8x8xf32>
    %234 = math.tanh %228 : vector<8x8xf32>
    %235 = vector.extract_strided_slice %233 {offsets = [0, 0], sizes = [8, 2], strides = [1, 1]} : vector<8x8xf32> to vector<8x2xf32>
    %236 = vector.extract_strided_slice %233 {offsets = [0, 2], sizes = [8, 2], strides = [1, 1]} : vector<8x8xf32> to vector<8x2xf32>
    %237 = vector.extract_strided_slice %234 {offsets = [0, 4], sizes = [8, 2], strides = [1, 1]} : vector<8x8xf32> to vector<8x2xf32>
    %238 = vector.extract_strided_slice %233 {offsets = [0, 6], sizes = [8, 2], strides = [1, 1]} : vector<8x8xf32> to vector<8x2xf32>
    %239 = arith.mulf %236, %223 : vector<8x2xf32>
    %240 = arith.mulf %235, %237 : vector<8x2xf32>
    %241 = arith.addf %239, %240 : vector<8x2xf32>
    %242 = math.tanh %241 : vector<8x2xf32>
    %243 = arith.mulf %238, %242 : vector<8x2xf32>
    %244 = tpu.concatenate %189, %207, %225, %243 in 0 : vector<8x2xf32>, vector<8x2xf32>, vector<8x2xf32>, vector<8x2xf32> -> vector<32x2xf32>
    %c0_37 = arith.constant 0 : index
    %c0_38 = arith.constant 0 : index
    %245 = vector.load %arg1[%c0_37, %c0_38] : memref<32x2xf32, #tpu.memory_space<vmem>>, vector<32x2xf32>
    tpu.vector_store %arg1[%c0_37, %c0_38], %244 {strides = array<i32>} : memref<32x2xf32, #tpu.memory_space<vmem>>, vector<32x2xf32>,
    return
  }
}

</mosaic_0001>

<bundles_post_ra>
// kernel: tpu_custom_call.1
= control target key start
LH: loop header
LB: loop body
LE: loop exit
PB: predicated region body
PF: predicated region fallthrough
CT: control target
= control target key end

     0   :  { %6 = vsyncpa [#allocation3], 0  ;;  %s1955_s6 = smov [#allocation2]   ;;  %s2166_s0 = inlined_call_operand.hbm [shape: f32[168,128], index: 0, kind: input, shape index: {}]   ;;  %s2167_s1 = inlined_call_operand.vmem [shape: f32[32,2], index: 1, kind: output, shape index: {}]  }
   0x1   :  { %s12_s7 = sshll.u32 %s1955_s6, 4  ;;  %s1931_s10 = scalar_lea.hbm %s2166_s0, 2688  ;;  %s13_s7 = int_to_ptr.vmem [resolvable:$true] %s12_s7 }
   0x2   :  { %p1932_p0 = scmp.ne.s32.totalorder %s2166_s0, %s1931_s10  ;;  %p1935_p1 = scmp.lt.u32.totalorder %s1931_s10, %s2166_s0 }
   0x4   :  { %p1937_p2 = pnand %p1935_p1, %p1932_p0 }
   0x6   :  { %1940 = shalt.err (!%p1937_p2)
}
   0x7   :  { %s1941_s15 = scalar_lea.vmem %s13_s7, 2688  ;;  %p1946_p4 = scmp.lt.s32.totalorder %s13_s7, %s13_s7 }
   0x8   :  { %p1942_p3 = scmp.ne.s32.totalorder %s13_s7, %s1941_s15  ;;  %p1947_p5 = scmp.lt.s32.totalorder %s1941_s15, %s1941_s15 }
   0xa   :  { %p1948_p6 = por %p1947_p5, %p1946_p4 }
   0xc   :  { %p1949_p7 = pnand %p1948_p6, %p1942_p3 }
   0xe   :  { %1952 = shalt.err (!%p1949_p7)
}
   0xf   :  { %s1956_s16 = smov 128   ;;  %s1957_s17 = smov 8  }
  0x10   :  { %18 = dma.hbm_to_vmem [thread:$0]  %s2166_s0, 2688, %s13_s7, [#allocation3], %s1956_s16, %s1956_s16, %s1957_s17  }
  0x11   :  { %1953 = dma.done.wait [#allocation3], 2688  }
  0x12   :  { %1954 = vsyncadd [#allocation3], 4294964608  ;;  %v1958_v0 = vmov 0.0|0.0   ;;  %vm1959_vm0 = vmmov 0   ;;  %v1960_v1 = vmov 0.0   ;;  %vm72_vm1 = vcmask 1043456  }
  0x13   :  { %1789 = vmatprep.subr.bf16.mxu1 %v1958_v0  ;;  %1700 = vmatprep.mubr.msk.f32.mxu1 %vm1959_vm0, %v1960_v1  ;;  %vm47_vm2 = vcmask 31744   ;;  %v22_v2 = vld [vmem:[#allocation2] sm:$0xf]  ;;  %v35_v3 = vld [vmem:[#allocation2 + $0x68] sm:$0xff]  ;;  %v36_v4 = vld [vmem:[#allocation2 + $0x70] sm:$0xff]  ;;  %vm181_vm3 = vcmask 130048  }
  0x14   :  { %1682 = vmatprep.subr.msk.mxu0 %vm72_vm1, %v22_v2  ;;  %1684 = vmatprep.mubr.msk.f32.mxu0 %vm47_vm2, %v35_v3  ;;  %v23_v5 = vld [vmem:[#allocation2 + $0x8] sm:$0xff]  ;;  %v24_v6 = vld [vmem:[#allocation2 + $0x10] sm:$0xff]  ;;  %v33_v8 = vld [vmem:[#allocation2 + $0x58] sm:$0xff]  ;;  %s1961_s0 = smov 96   ;;  %s1962_s20 = smov 16   ;;  %vm1170_vm4 = vcmask 1041408  }
  0x15   :  { %1683 = vmatpush3.msk.msra.mxu0 %vm72_vm1, %v22_v2  ;;  %v1995_v7 = vpack.c.bf16 %v24_v6, %v23_v5  ;;  %v2008_v9 = vld [vmem:[#allocation2 + $0x18] ss:$0 sm:$0xff]  ;;  %v34_v17 = vld [vmem:[#allocation2 + $0x60] sm:$0xff]  ;;  %s1963_s21 = smov 32   ;;  %s1964_s22 = smov 80   ;;  %vm1166_vm5 = vcmask 15360  }
  0x16   :  { %1685 = vmatmul.mubr.msk.f32.vlgmr.msra.gmra.mrb[0].mxu0 %vm47_vm2, %v36_v4  ;;  %1801 = vmatprep.subr.bf16.mxu0 %v1958_v0  ;;  %v37_v46 = vld [vmem:[#allocation2 + $0x78] sm:$0xff]  ;;  %v38_v47 = vld [vmem:[#allocation2 + $0x80] sm:$0xff]  ;;  %s1965_s23 = smov 124   ;;  %s1966_s24 = smov 2  }
  0x17   :  { %1791 = vmatpush3.bf16.msra.mxu1 %v1995_v7  ;;  %1803 = vmatpush3.bf16.msra.mxu0 %v1995_v7  ;;  %s1967_s25 = smov 4   ;;  %s1968_s26 = smov 122  }
  0x18   :  { %1792 = vmatprep.subr.bf16.mxu1 %v1958_v0  ;;  %1807 = vmatprep.subr.bf16.mxu0 %v1958_v0 }
  0x19   :  { %1687 = vmatprep.mubr.msk.f32.mxu0 %vm47_vm2, %v37_v46 }
  0x1a   :  { %1701 = vmatmul.mubr.msk.f32.vlgmr.msra.gmra.mrb[0].mxu1 %vm181_vm3, %v33_v8  ;;  %1688 = vmatmul.mubr.msk.f32.gmra.mrb[2].mxu0 %vm47_vm2, %v38_v47 }
  0x1b   :  { %1794 = vmatpush3.bf16.msra.mxu1 %v1995_v7  ;;  %1707 = vmatprep.mubr.msk.f32.mxu1 %vm1959_vm0, %v1960_v1 }
  0x1c   :  { %1795 = vmatprep.subr.bf16.mxu1 %v1958_v0 }
  0xe9   :  { %v1686_v10 = vpop.f32.mrb[0].mxu0 }
  0xea   :  { %v142_v11 = vpop.f32.mrb[1].mxu0  ;;  %v148_v32 = vadd.f32 %v1686_v10, %v2008_v9 }
  0xeb   :  { %v143_v12 = vadd.f32 %v2008_v9, %v142_v11 }
  0xed   :  { %v251_v13 = vpop.f32.mrb[0].mxu1  ;;  %v1689_v51 = vpop.f32.mrb[2].mxu0 }
  0xee   :  { %v255_v14 = vadd.f32 %v251_v13, %v143_v12  ;;  %v1702_v15 = vpop.f32.mrb[1].mxu1  ;;  %v152_v52 = vpop.f32.mrb[3].mxu0  ;;  %v158_v12 = vadd.f32 %v1689_v51, %v2008_v9 }
  0xef   :  { %v153_v54 = vadd.f32 %v2008_v9, %v152_v52 }
  0xf0   :  { %1835 = vtanh.f32 %v255_v14  ;;  %v1596_v18 = vmul.f32 -1.442695, %v255_v14 }
  0xf2   :  { %1837 = vpow2.f32 %v1596_v18 }
  0xfa   :  { %v1836_v16 = vpop.eup %1835 }
  0xfb   :  { %269 = vrot.lane.b32.xlu0 %v1836_v16, %s1961_s0 }
  0xfc   :  { %v1838_v19 = vpop.eup %1837 }
  0xfd   :  { %v259_v20 = vadd.f32 1.0, %v1838_v19 }
  0xff   :  { %264 = vrot.lane.b32.xlu0 %v34_v17, %s1962_s20  ;;  %1839 = vrcp.f32 %v259_v20 }
 0x109   :  { %v1840_v21 = vpop.eup %1839 }
 0x16d   :  { %v270_v22 = vpop.permute.xlu0 %269 }
 0x16e   :  { %v272_v23 = vmul.f32 %v1840_v21, %v270_v22 }
 0x170   :  { %274 = vrot.lane.b32.xlu1 %v272_v23, %s1962_s20 }
 0x171   :  { %v265_v24 = vpop.permute.xlu0 %264 }
 0x172   :  { %v267_v25 = vmul.f32 %v1840_v21, %v265_v24 }
 0x1e2   :  { %v275_v26 = vpop.permute.xlu1 %274 }
 0x1e3   :  { %v277_v27 = vadd.f32 %v275_v26, %v267_v25  ;;  %v39_v25 = vld [vmem:[#allocation2 + $0x88] sm:$0xff]  ;;  %v40_v26 = vld [vmem:[#allocation2 + $0x90] sm:$0xff] }
 0x1e4   :  { %1690 = vmatprep.mubr.msk.f32.mxu0 %vm47_vm2, %v39_v25 }
 0x1e5   :  { %1841 = vtanh.f32 %v277_v27  ;;  %1691 = vmatmul.mubr.msk.f32.gmra.mrb[4].mxu0 %vm47_vm2, %v40_v26  ;;  %v29_v26 = vld [vmem:[#allocation2 + $0x38] sm:$0xff] }
 0x1ef   :  { %v1842_v28 = vpop.eup %1841 }
 0x1f0   :  { %280 = vrot.lane.b32.xlu1 %v1842_v28, %s1963_s21  ;;  %v42_v28 = vld [vmem:[#allocation2 + $0xa0] sm:$0xff] }
 0x262   :  { %v281_v29 = vpop.permute.xlu1 %280 }
 0x263   :  { %v283_v30 = vmul.f32 %v1840_v21, %v281_v29 }
 0x265   :  { %285 = vrot.lane.b32.xlu0 %v283_v30, %s1964_s22 }
 0x2d7   :  { %v286_v31 = vpop.permute.xlu0 %285 }
 0x2d8   :  { %1708 = vmatmul.mubr.msk.f32.vlgmr.msra.gmra.mrb[2].mxu1 %vm181_vm3, %v286_v31 }
 0x2d9   :  { %1797 = vmatpush3.bf16.msra.mxu1 %v1995_v7  ;;  %1714 = vmatprep.mubr.msk.f32.mxu1 %vm1959_vm0, %v1960_v1 }
 0x2da   :  { %1798 = vmatprep.subr.bf16.mxu1 %v1958_v0 }
 0x3ab   :  { %v355_v33 = vpop.f32.mrb[2].mxu1 }
 0x3ac   :  { %v359_v34 = vadd.f32 %v355_v33, %v148_v32  ;;  %v1709_v35 = vpop.f32.mrb[3].mxu1  ;;  %v1692_v32 = vpop.f32.mrb[4].mxu0 }
 0x3ad   :  { %v162_v33 = vpop.f32.mrb[5].mxu0 }
 0x3ae   :  { %1843 = vtanh.f32 %v359_v34  ;;  %v1598_v37 = vmul.f32 -1.442695, %v359_v34 }
 0x3b0   :  { %1845 = vpow2.f32 %v1598_v37  ;;  %v163_v37 = vadd.f32 %v2008_v9, %v162_v33 }
 0x3b8   :  { %v1844_v36 = vpop.eup %1843 }
 0x3b9   :  { %369 = vrot.lane.b32.xlu1 %v1844_v36, %s1961_s0 }
 0x3ba   :  { %v1846_v38 = vpop.eup %1845 }
 0x3bb   :  { %v363_v39 = vadd.f32 1.0, %v1846_v38 }
 0x3bd   :  { %1847 = vrcp.f32 %v363_v39 }
 0x3c7   :  { %v1848_v40 = vpop.eup %1847 }
 0x3c8   :  { %v367_v43 = vmul.f32 %v1848_v40, %v277_v27  ;;  %v41_v27 = vld [vmem:[#allocation2 + $0x98] sm:$0xff] }
 0x3c9   :  { %1693 = vmatprep.mubr.msk.f32.mxu0 %vm47_vm2, %v41_v27  ;;  %v30_v27 = vld [vmem:[#allocation2 + $0x40] sm:$0xff] }
 0x3ca   :  { %1694 = vmatmul.mubr.msk.f32.gmra.mrb[6].mxu0 %vm47_vm2, %v42_v28  ;;  %v1817_v28 = vpack.c.bf16 %v30_v27, %v29_v26 }
 0x3cb   :  { %1728 = vmatprep.mubr.msk.f32.mxu0 %vm1959_vm0, %v1960_v1 }
 0x42b   :  { %v370_v41 = vpop.permute.xlu1 %369 }
 0x42c   :  { %v372_v42 = vmul.f32 %v1848_v40, %v370_v41 }
 0x42e   :  { %374 = vrot.lane.b32.xlu0 %v372_v42, %s1962_s20 }
 0x49d   :  { %v2054_v34 = vpop.f32.mrb[6].mxu0 }
 0x49e   :  { %v172_v35 = vpop.f32.mrb[7].mxu0 }
 0x4a0   :  { %v375_v44 = vpop.permute.xlu0 %374 }
 0x4a1   :  { %v377_v45 = vadd.f32 %v375_v44, %v367_v43 }
 0x4a3   :  { %1849 = vtanh.f32 %v377_v45 }
 0x4ad   :  { %v1850_v48 = vpop.eup %1849 }
 0x4ae   :  { %380 = vrot.lane.b32.xlu1 %v1850_v48, %s1963_s21 }
 0x520   :  { %v381_v49 = vpop.permute.xlu1 %380 }
 0x521   :  { %v383_v50 = vmul.f32 %v1848_v40, %v381_v49 }
 0x523   :  { %385 = vrot.lane.b32.xlu0 %v383_v50, %s1964_s22 }
 0x595   :  { %v386_v53 = vpop.permute.xlu0 %385 }
 0x596   :  { %1715 = vmatmul.mubr.msk.f32.vlgmr.msra.gmra.mrb[4].mxu1 %vm181_vm3, %v386_v53 }
 0x597   :  { %1800 = vmatpush3.bf16.msra.mxu1 %v1995_v7  ;;  %1721 = vmatprep.mubr.msk.f32.mxu1 %vm1959_vm0, %v1960_v1 }
 0x598   :  { %1804 = vmatprep.subr.bf16.mxu1 %v1958_v0 }
 0x669   :  { %v455_v55 = vpop.f32.mrb[4].mxu1 }
 0x66a   :  { %v459_v56 = vadd.f32 %v455_v55, %v153_v54  ;;  %v1716_v57 = vpop.f32.mrb[5].mxu1  ;;  %v168_v55 = vadd.f32 %v1692_v32, %v2008_v9  ;;  %v178_v32 = vadd.f32 %v2054_v34, %v2008_v9 }
 0x66c   :  { %1851 = vtanh.f32 %v459_v56  ;;  %v1600_v59 = vmul.f32 -1.442695, %v459_v56 }
 0x66e   :  { %1853 = vpow2.f32 %v1600_v59 }
 0x676   :  { %v1852_v58 = vpop.eup %1851 }
 0x677   :  { %469 = vrot.lane.b32.xlu1 %v1852_v58, %s1961_s0 }
 0x678   :  { %v1854_v60 = vpop.eup %1853 }
 0x679   :  { %v463_v61 = vadd.f32 1.0, %v1854_v60 }
 0x67b   :  { %1855 = vrcp.f32 %v463_v61 }
 0x685   :  { %v1856_v62 = vpop.eup %1855 }
 0x686   :  { %v467_v3 = vmul.f32 %v1856_v62, %v377_v45 }
 0x6e9   :  { %v470_v63 = vpop.permute.xlu1 %469 }
 0x6ea   :  { %v472_v2 = vmul.f32 %v1856_v62, %v470_v63 }
 0x6ec   :  { %474 = vrot.lane.b32.xlu0 %v472_v2, %s1962_s20 }
 0x75e   :  { %v475_v4 = vpop.permute.xlu0 %474 }
 0x75f   :  { %v477_v5 = vadd.f32 %v475_v4, %v467_v3 }
 0x761   :  { %1857 = vtanh.f32 %v477_v5 }
 0x76b   :  { %v1858_v6 = vpop.eup %1857 }
 0x76c   :  { %480 = vrot.lane.b32.xlu1 %v1858_v6, %s1963_s21 }
 0x7de   :  { %v481_v8 = vpop.permute.xlu1 %480 }
 0x7df   :  { %v483_v10 = vmul.f32 %v1856_v62, %v481_v8 }
 0x7e1   :  { %485 = vrot.lane.b32.xlu0 %v483_v10, %s1964_s22 }
 0x853   :  { %v486_v11 = vpop.permute.xlu0 %485 }
 0x854   :  { %1722 = vmatmul.mubr.msk.f32.vlgmr.msra.gmra.mrb[6].mxu1 %vm181_vm3, %v486_v11 }
 0x855   :  { %1806 = vmatpush3.bf16.msra.mxu1 %v1995_v7  ;;  %1735 = vmatprep.mubr.msk.f32.mxu1 %vm1959_vm0, %v1960_v1 }
 0x856   :  { %1810 = vmatprep.subr.bf16.mxu1 %v1958_v0 }
 0x927   :  { %v555_v13 = vpop.f32.mrb[6].mxu1 }
 0x928   :  { %v559_v14 = vadd.f32 %v555_v13, %v158_v12  ;;  %v1723_v15 = vpop.f32.mrb[7].mxu1  ;;  %v173_v12 = vadd.f32 %v2008_v9, %v172_v35 }
 0x92a   :  { %1859 = vtanh.f32 %v559_v14  ;;  %v1602_v17 = vmul.f32 -1.442695, %v559_v14 }
 0x92c   :  { %1861 = vpow2.f32 %v1602_v17 }
 0x934   :  { %v1860_v16 = vpop.eup %1859 }
 0x935   :  { %569 = vrot.lane.b32.xlu1 %v1860_v16, %s1961_s0 }
 0x936   :  { %v1862_v18 = vpop.eup %1861 }
 0x937   :  { %v563_v19 = vadd.f32 1.0, %v1862_v18 }
 0x939   :  { %1863 = vrcp.f32 %v563_v19 }
 0x943   :  { %v1864_v20 = vpop.eup %1863 }
 0x944   :  { %v567_v0 = vmul.f32 %v1864_v20, %v477_v5 }
 0x9a7   :  { %v570_v21 = vpop.permute.xlu1 %569 }
 0x9a8   :  { %v572_v22 = vmul.f32 %v1864_v20, %v570_v21 }
 0x9aa   :  { %574 = vrot.lane.b32.xlu0 %v572_v22, %s1962_s20 }
 0xa1c   :  { %v575_v23 = vpop.permute.xlu0 %574 }
 0xa1d   :  { %v577_v24 = vadd.f32 %v575_v23, %v567_v0 }
 0xa1f   :  { %1865 = vtanh.f32 %v577_v24 }
 0xa29   :  { %v1866_v29 = vpop.eup %1865 }
 0xa2a   :  { %580 = vrot.lane.b32.xlu1 %v1866_v29, %s1963_s21 }
 0xa9c   :  { %v581_v30 = vpop.permute.xlu1 %580 }
 0xa9d   :  { %v583_v31 = vmul.f32 %v1864_v20, %v581_v30 }
 0xa9f   :  { %585 = vrot.lane.b32.xlu0 %v583_v31, %s1964_s22 }
 0xb11   :  { %v586_v36 = vpop.permute.xlu0 %585 }
 0xb12   :  { %1729 = vmatmul.mubr.msk.f32.vlgmr.msra.gmra.mrb[8].mxu0 %vm181_vm3, %v586_v36 }
 0xb13   :  { %1809 = vmatpush3.bf16.msra.mxu0 %v1995_v7  ;;  %1742 = vmatprep.mubr.msk.f32.mxu0 %vm1959_vm0, %v1960_v1 }
 0xbe5   :  { %v655_v38 = vpop.f32.mrb[8].mxu0 }
 0xbe6   :  { %v659_v39 = vadd.f32 %v655_v38, %v163_v37  ;;  %v1730_v40 = vpop.f32.mrb[9].mxu0 }
 0xbe8   :  { %1867 = vtanh.f32 %v659_v39  ;;  %v1604_v42 = vmul.f32 -1.442695, %v659_v39 }
 0xbea   :  { %1869 = vpow2.f32 %v1604_v42 }
 0xbf2   :  { %v1868_v41 = vpop.eup %1867 }
 0xbf3   :  { %669 = vrot.lane.b32.xlu1 %v1868_v41, %s1961_s0 }
 0xbf4   :  { %v1870_v43 = vpop.eup %1869 }
 0xbf5   :  { %v663_v44 = vadd.f32 1.0, %v1870_v43 }
 0xbf7   :  { %1871 = vrcp.f32 %v663_v44 }
 0xc01   :  { %v1872_v45 = vpop.eup %1871 }
 0xc02   :  { %v667_v48 = vmul.f32 %v1872_v45, %v577_v24 }
 0xc65   :  { %v670_v46 = vpop.permute.xlu1 %669 }
 0xc66   :  { %v672_v47 = vmul.f32 %v1872_v45, %v670_v46 }
 0xc68   :  { %674 = vrot.lane.b32.xlu0 %v672_v47, %s1962_s20 }
 0xcda   :  { %v675_v49 = vpop.permute.xlu0 %674 }
 0xcdb   :  { %v677_v50 = vadd.f32 %v675_v49, %v667_v48  ;;  %v26_v48 = vld [vmem:[#allocation2 + $0x20] sm:$0xff]  ;;  %v27_v49 = vld [vmem:[#allocation2 + $0x28] sm:$0xff] }
 0xcdd   :  { %1873 = vtanh.f32 %v677_v50 }
 0xce7   :  { %v1874_v51 = vpop.eup %1873 }
 0xce8   :  { %680 = vrot.lane.b32.xlu1 %v1874_v51, %s1963_s21 }
 0xd5a   :  { %v681_v52 = vpop.permute.xlu1 %680 }
 0xd5b   :  { %v683_v53 = vmul.f32 %v1872_v45, %v681_v52 }
 0xd5d   :  { %685 = vrot.lane.b32.xlu0 %v683_v53, %s1964_s22 }
 0xdcf   :  { %v2065_v54 = vpop.permute.xlu0 %685 }
 0xdd0   :  { %1736 = vmatmul.mubr.msk.f32.vlgmr.msra.gmra.mrb[8].mxu1 %vm181_vm3, %v2065_v54 }
 0xdd1   :  { %1812 = vmatpush3.bf16.msra.mxu1 %v1995_v7  ;;  %1749 = vmatprep.mubr.msk.f32.mxu1 %vm1959_vm0, %v1960_v1 }
 0xdd2   :  { %1818 = vmatprep.subr.bf16.mxu1 %v1817_v28 }
 0xea3   :  { %v755_v56 = vpop.f32.mrb[8].mxu1 }
 0xea4   :  { %v759_v57 = vadd.f32 %v755_v56, %v168_v55  ;;  %v1737_v58 = vpop.f32.mrb[9].mxu1  ;;  %v31_v56 = vld [vmem:[#allocation2 + $0x48] sm:$0x3] }
 0xea6   :  { %1875 = vtanh.f32 %v759_v57  ;;  %v1606_v60 = vmul.f32 -1.442695, %v759_v57  ;;  %v1613_v57 = vld [vmem:[#allocation2 + $0x30] ss:$0 sm:$0xff] }
 0xea8   :  { %1877 = vpow2.f32 %v1606_v60 }
 0xeb0   :  { %v1876_v59 = vpop.eup %1875 }
 0xeb1   :  { %769 = vrot.lane.b32.xlu1 %v1876_v59, %s1961_s0 }
 0xeb2   :  { %v1878_v61 = vpop.eup %1877 }
 0xeb3   :  { %v763_v62 = vadd.f32 1.0, %v1878_v61 }
 0xeb5   :  { %1879 = vrcp.f32 %v763_v62 }
 0xebf   :  { %v1880_v63 = vpop.eup %1879 }
 0xec0   :  { %v767_v3 = vmul.f32 %v1880_v63, %v677_v50  ;;  %v1813_v50 = vpack.c.bf16 %v27_v49, %v26_v48 }
 0xec2   :  { %1814 = vmatprep.subr.bf16.mxu0 %v1813_v50 }
 0xf23   :  { %v770_v2 = vpop.permute.xlu1 %769 }
 0xf24   :  { %v772_v7 = vmul.f32 %v1880_v63, %v770_v2  ;;  %v2119_v2 = vld [vmem:[#allocation2 + $0x50] ss:$0 sm:$0xff] }
 0xf26   :  { %774 = vrot.lane.b32.xlu0 %v772_v7, %s1962_s20 }
 0xf98   :  { %v775_v4 = vpop.permute.xlu0 %774 }
 0xf99   :  { %v777_v5 = vadd.f32 %v775_v4, %v767_v3 }
 0xf9b   :  { %1881 = vtanh.f32 %v777_v5 }
 0xfa5   :  { %v1882_v6 = vpop.eup %1881 }
 0xfa6   :  { %780 = vrot.lane.b32.xlu1 %v1882_v6, %s1963_s21 }
0x1018   :  { %v781_v8 = vpop.permute.xlu1 %780 }
0x1019   :  { %v783_v10 = vmul.f32 %v1880_v63, %v781_v8 }
0x101b   :  { %785 = vrot.lane.b32.xlu0 %v783_v10, %s1964_s22 }
0x108d   :  { %v786_v11 = vpop.permute.xlu0 %785 }
0x108e   :  { %1743 = vmatmul.mubr.msk.f32.vlgmr.msra.gmra.mrb[10].mxu0 %vm181_vm3, %v786_v11 }
0x108f   :  { %1816 = vmatpush3.bf16.msra.mxu0 %v1813_v50 }
0x1090   :  { %1769 = vmatprep.subr.mxu0 %v1960_v1 }
0x1161   :  { %v855_v13 = vpop.f32.mrb[10].mxu0 }
0x1162   :  { %v859_v14 = vadd.f32 %v855_v13, %v173_v12  ;;  %v1744_v15 = vpop.f32.mrb[11].mxu0 }
0x1164   :  { %1883 = vtanh.f32 %v859_v14  ;;  %v1608_v17 = vmul.f32 -1.442695, %v859_v14 }
0x1166   :  { %1885 = vpow2.f32 %v1608_v17 }
0x116e   :  { %v1884_v16 = vpop.eup %1883 }
0x116f   :  { %869 = vrot.lane.b32.xlu1 %v1884_v16, %s1961_s0 }
0x1170   :  { %v1886_v18 = vpop.eup %1885 }
0x1171   :  { %v863_v19 = vadd.f32 1.0, %v1886_v18 }
0x1173   :  { %1887 = vrcp.f32 %v863_v19 }
0x117d   :  { %v1888_v20 = vpop.eup %1887 }
0x117e   :  { %v867_v0 = vmul.f32 %v1888_v20, %v777_v5 }
0x11e1   :  { %v870_v21 = vpop.permute.xlu1 %869 }
0x11e2   :  { %v872_v22 = vmul.f32 %v1888_v20, %v870_v21 }
0x11e4   :  { %874 = vrot.lane.b32.xlu0 %v872_v22, %s1962_s20 }
0x1256   :  { %v875_v23 = vpop.permute.xlu0 %874 }
0x1257   :  { %v877_v24 = vadd.f32 %v875_v23, %v867_v0 }
0x1259   :  { %1889 = vtanh.f32 %v877_v24 }
0x1263   :  { %v1890_v25 = vpop.eup %1889 }
0x1264   :  { %880 = vrot.lane.b32.xlu1 %v1890_v25, %s1963_s21 }
0x12d6   :  { %v881_v29 = vpop.permute.xlu1 %880 }
0x12d7   :  { %v883_v30 = vmul.f32 %v1888_v20, %v881_v29 }
0x12d9   :  { %885 = vrot.lane.b32.xlu0 %v883_v30, %s1964_s22 }
0x134b   :  { %v886_v31 = vpop.permute.xlu0 %885 }
0x134c   :  { %1750 = vmatmul.mubr.msk.f32.vlgmr.msra.gmra.mrb[10].mxu1 %vm181_vm3, %v886_v31 }
0x134d   :  { %1820 = vmatpush3.bf16.msra.mxu1 %v1817_v28  ;;  %1763 = vmatprep.mubr.msk.f32.mxu1 %vm181_vm3, %v2065_v54 }
0x134e   :  { %1779 = vmatprep.subr.mxu1 %v1960_v1 }
0x1350   :  { %1764 = vmatmul.mubr.msk.f32.vlgmr.msra.gmra.mrb[12].mxu1 %vm181_vm3, %v786_v11 }
0x1351   :  { %1766 = vmatprep.mubr.msk.f32.mxu1 %vm181_vm3, %v886_v31  ;;  %1780 = vmatpush3.msk.msra.mxu1 %vm1170_vm4, %v31_v56 }
0x141f   :  { %v955_v33 = vpop.f32.mrb[10].mxu1 }
0x1420   :  { %v959_v35 = vadd.f32 %v955_v33, %v178_v32  ;;  %v1751_v36 = vpop.f32.mrb[11].mxu1 }
0x1422   :  { %1891 = vtanh.f32 %v959_v35  ;;  %v1610_v40 = vmul.f32 -1.442695, %v959_v35 }
0x1423   :  { %v2091_v37 = vpop.f32.mrb[12].mxu1 }
0x1424   :  { %v1147_v38 = vpop.f32.mrb[13].mxu1  ;;  %1893 = vpow2.f32 %v1610_v40  ;;  %v1153_v22 = vadd.f32 %v2091_v37, %v2119_v2 }
0x1425   :  { %v1148_v7 = vadd.f32 %v2119_v2, %v1147_v38 }
0x142c   :  { %v1892_v39 = vpop.eup %1891 }
0x142d   :  { %969 = vrot.lane.b32.xlu1 %v1892_v39, %s1961_s0 }
0x142e   :  { %v1894_v41 = vpop.eup %1893 }
0x142f   :  { %v963_v42 = vadd.f32 1.0, %v1894_v41 }
0x1431   :  { %1895 = vrcp.f32 %v963_v42 }
0x143b   :  { %v1896_v43 = vpop.eup %1895 }
0x143c   :  { %v967_v9 = vmul.f32 %v1896_v43, %v877_v24 }
0x149f   :  { %v970_v44 = vpop.permute.xlu1 %969 }
0x14a0   :  { %v972_v45 = vmul.f32 %v1896_v43, %v970_v44 }
0x14a2   :  { %974 = vrot.lane.b32.xlu0 %v972_v45, %s1962_s20 }
0x1514   :  { %v975_v34 = vpop.permute.xlu0 %974 }
0x1515   :  { %v977_v46 = vadd.f32 %v975_v34, %v967_v9 }
0x1517   :  { %1897 = vtanh.f32 %v977_v46  ;;  %985 = vrot.lane.b32.xlu0 %v977_v46, %s1963_s21 }
0x1521   :  { %v1898_v47 = vpop.eup %1897 }
0x1522   :  { %980 = vrot.lane.b32.xlu1 %v1898_v47, %s1963_s21 }
0x1589   :  { %v986_v51 = vpop.permute.xlu0 %985 }
0x158a   :  { %990 = vrot.lane.b32.xlu0 %v986_v51, %s1964_s22 }
0x1594   :  { %v981_v52 = vpop.permute.xlu1 %980 }
0x1595   :  { %v983_v53 = vmul.f32 %v1896_v43, %v981_v52 }
0x1597   :  { %988 = vrot.lane.b32.xlu1 %v983_v53, %s1964_s22 }
0x15fc   :  { %v991_v55 = vpop.permute.xlu0 %990 }
0x1609   :  { %v989_v54 = vpop.permute.xlu1 %988 }
0x160a   :  { %1756 = vmatprep.mubr.msk.f32.mxu0 %vm181_vm3, %v989_v54  ;;  %1767 = vmatmul.mubr.msk.f32.gmra.mrb[14].mxu1 %vm181_vm3, %v989_v54 }
0x160b   :  { %1757 = vmatmul.mubr.msk.f32.vlgmr.msra.gmra.mrb[12].mxu0 %vm181_vm3, %v991_v55  ;;  %1781 = vmatprep.mubr.msk.f32.mxu1 %vm1959_vm0, %v1960_v1 }
0x160c   :  { %1771 = vmatprep.mubr.msk.f32.mxu0 %vm1959_vm0, %v1960_v1  ;;  %1770 = vmatpush3.msk.msra.mxu0 %vm1170_vm4, %v31_v56 }
0x160d   :  { %1774 = vmatprep.subr.mxu0 %v1960_v1 }
0x16dd   :  { %v2110_v58 = vpop.f32.mrb[14].mxu1 }
0x16de   :  { %v1758_v59 = vpop.f32.mrb[12].mxu0  ;;  %v2112_v60 = vpop.f32.mrb[15].mxu1  ;;  %v1163_v55 = vadd.f32 %v2110_v58, %v2119_v2 }
0x16df   :  { %v1076_v61 = vadd.f32 %v1758_v59, %v1613_v57  ;;  %v1062_v62 = vpop.f32.mrb[13].mxu0  ;;  %v1158_v39 = vadd.f32 %v2119_v2, %v2112_v60 }
0x16e0   :  { %v1075_v63 = vadd.f32 %v1613_v57, %v1062_v62 }
0x16e2   :  { %1772 = vmatmul.mubr.msk.f32.vlgmr.msra.gmra.mrb[14].mxu0 %vm1166_vm5, %v1075_v63 }
0x16e3   :  { %1775 = vmatpush3.msk.msra.mxu0 %vm1170_vm4, %v31_v56  ;;  %1776 = vmatprep.mubr.msk.f32.mxu0 %vm1959_vm0, %v1960_v1 }
0x16e4   :  { %1784 = vmatprep.subr.mxu0 %v1960_v1 }
0x17b5   :  { %v1240_v3 = vpop.f32.mrb[14].mxu0 }
0x17b6   :  { %v1244_v4 = vadd.f32 %v1240_v3, %v1148_v7  ;;  %v1773_v5 = vpop.f32.mrb[15].mxu0 }
0x17b8   :  { %1899 = vtanh.f32 %v1244_v4  ;;  %v1621_v8 = vmul.f32 -1.442695, %v1244_v4 }
0x17ba   :  { %1901 = vpow2.f32 %v1621_v8 }
0x17c2   :  { %v1900_v6 = vpop.eup %1899 }
0x17c3   :  { %1254 = vrot.lane.b32.xlu1 %v1900_v6, %s1965_s23 }
0x17c4   :  { %v1902_v10 = vpop.eup %1901 }
0x17c5   :  { %v1248_v11 = vadd.f32 1.0, %v1902_v10 }
0x17c7   :  { %1903 = vrcp.f32 %v1248_v11 }
0x17d1   :  { %v1904_v12 = vpop.eup %1903 }
0x17d2   :  { %v1252_v15 = vmul.f32 %v1904_v12, %v1076_v61 }
0x1835   :  { %v1255_v13 = vpop.permute.xlu1 %1254 }
0x1836   :  { %v1257_v14 = vmul.f32 %v1904_v12, %v1255_v13 }
0x1838   :  { %1259 = vrot.lane.b32.xlu0 %v1257_v14, %s1966_s24 }
0x18aa   :  { %v1260_v16 = vpop.permute.xlu0 %1259 }
0x18ab   :  { %v1262_v17 = vadd.f32 %v1260_v16, %v1252_v15 }
0x18ad   :  { %1905 = vtanh.f32 %v1262_v17 }
0x18b7   :  { %v1906_v18 = vpop.eup %1905 }
0x18b8   :  { %1265 = vrot.lane.b32.xlu1 %v1906_v18, %s1967_s25 }
0x192a   :  { %v1266_v19 = vpop.permute.xlu1 %1265 }
0x192b   :  { %v1268_v20 = vmul.f32 %v1904_v12, %v1266_v19 }
0x192d   :  { %1270 = vrot.lane.b32.xlu0 %v1268_v20, %s1968_s26 }
0x199f   :  { %v1271_v21 = vpop.permute.xlu0 %1270 }
0x19a0   :  { %1576 = vst.msk [vmem:[%s2167_s1] sm:$0xff] %vm1166_vm5, %v1271_v21  ;;  %1777 = vmatmul.mubr.msk.f32.vlgmr.msra.gmra.mrb[16].mxu0 %vm1166_vm5, %v1271_v21 }
0x19a1   :  { %1785 = vmatpush3.msk.msra.mxu0 %vm1170_vm4, %v31_v56  ;;  %1786 = vmatprep.mubr.msk.f32.mxu0 %vm1959_vm0, %v1960_v1 }
0x1a73   :  { %v1340_v0 = vpop.f32.mrb[16].mxu0 }
0x1a74   :  { %v1344_v23 = vadd.f32 %v1340_v0, %v1153_v22  ;;  %v1778_v24 = vpop.f32.mrb[17].mxu0 }
0x1a76   :  { %1907 = vtanh.f32 %v1344_v23  ;;  %v1624_v26 = vmul.f32 -1.442695, %v1344_v23 }
0x1a78   :  { %1909 = vpow2.f32 %v1624_v26 }
0x1a80   :  { %v1908_v25 = vpop.eup %1907 }
0x1a81   :  { %1354 = vrot.lane.b32.xlu1 %v1908_v25, %s1965_s23 }
0x1a82   :  { %v1910_v27 = vpop.eup %1909 }
0x1a83   :  { %v1348_v28 = vadd.f32 1.0, %v1910_v27 }
0x1a85   :  { %1911 = vrcp.f32 %v1348_v28 }
0x1a8f   :  { %v1912_v29 = vpop.eup %1911 }
0x1a90   :  { %v1352_v1 = vmul.f32 %v1912_v29, %v1262_v17 }
0x1af3   :  { %v1355_v30 = vpop.permute.xlu1 %1354 }
0x1af4   :  { %v1357_v31 = vmul.f32 %v1912_v29, %v1355_v30 }
0x1af6   :  { %1359 = vrot.lane.b32.xlu0 %v1357_v31, %s1966_s24 }
0x1b68   :  { %v1360_v32 = vpop.permute.xlu0 %1359 }
0x1b69   :  { %v1362_v33 = vadd.f32 %v1360_v32, %v1352_v1 }
0x1b6b   :  { %1913 = vtanh.f32 %v1362_v33 }
0x1b75   :  { %v1914_v35 = vpop.eup %1913 }
0x1b76   :  { %1365 = vrot.lane.b32.xlu1 %v1914_v35, %s1967_s25 }
0x1be8   :  { %v1366_v36 = vpop.permute.xlu1 %1365 }
0x1be9   :  { %v1368_v37 = vmul.f32 %v1912_v29, %v1366_v36 }
0x1beb   :  { %1370 = vrot.lane.b32.xlu0 %v1368_v37, %s1968_s26 }
0x1c5d   :  { %v1371_v38 = vpop.permute.xlu0 %1370 }
0x1c5e   :  { %1577 = vst.msk [vmem:[%s2167_s1 + $0x8] sm:$0xff] %vm1166_vm5, %v1371_v38  ;;  %1782 = vmatmul.mubr.msk.f32.vlgmr.msra.gmra.mrb[16].mxu1 %vm1166_vm5, %v1371_v38 }
0x1d31   :  { %v1440_v40 = vpop.f32.mrb[16].mxu1 }
0x1d32   :  { %v1444_v41 = vadd.f32 %v1440_v40, %v1158_v39  ;;  %v1783_v42 = vpop.f32.mrb[17].mxu1 }
0x1d34   :  { %1915 = vtanh.f32 %v1444_v41  ;;  %v1627_v44 = vmul.f32 -1.442695, %v1444_v41 }
0x1d36   :  { %1917 = vpow2.f32 %v1627_v44 }
0x1d3e   :  { %v1916_v43 = vpop.eup %1915 }
0x1d3f   :  { %1454 = vrot.lane.b32.xlu1 %v1916_v43, %s1965_s23 }
0x1d40   :  { %v1918_v45 = vpop.eup %1917 }
0x1d41   :  { %v1448_v9 = vadd.f32 1.0, %v1918_v45 }
0x1d43   :  { %1919 = vrcp.f32 %v1448_v9 }
0x1d4d   :  { %v1920_v34 = vpop.eup %1919 }
0x1d4e   :  { %v1452_v48 = vmul.f32 %v1920_v34, %v1362_v33 }
0x1db1   :  { %v1455_v46 = vpop.permute.xlu1 %1454 }
0x1db2   :  { %v1457_v47 = vmul.f32 %v1920_v34, %v1455_v46 }
0x1db4   :  { %1459 = vrot.lane.b32.xlu0 %v1457_v47, %s1966_s24 }
0x1e26   :  { %v1460_v49 = vpop.permute.xlu0 %1459 }
0x1e27   :  { %v1462_v50 = vadd.f32 %v1460_v49, %v1452_v48 }
0x1e29   :  { %1921 = vtanh.f32 %v1462_v50 }
0x1e33   :  { %v1922_v51 = vpop.eup %1921 }
0x1e34   :  { %1465 = vrot.lane.b32.xlu1 %v1922_v51, %s1967_s25 }
0x1ea6   :  { %v1466_v52 = vpop.permute.xlu1 %1465 }
0x1ea7   :  { %v1468_v53 = vmul.f32 %v1920_v34, %v1466_v52 }
0x1ea9   :  { %1470 = vrot.lane.b32.xlu0 %v1468_v53, %s1968_s26 }
0x1f1b   :  { %v1471_v54 = vpop.permute.xlu0 %1470 }
0x1f1c   :  { %1578 = vst.msk [vmem:[%s2167_s1 + $0x10] sm:$0xff] %vm1166_vm5, %v1471_v54  ;;  %1787 = vmatmul.mubr.msk.f32.vlgmr.msra.gmra.mrb[18].mxu0 %vm1166_vm5, %v1471_v54 }
0x1fef   :  { %v1540_v56 = vpop.f32.mrb[18].mxu0 }
0x1ff0   :  { %v1544_v57 = vadd.f32 %v1540_v56, %v1163_v55  ;;  %v1788_v59 = vpop.f32.mrb[19].mxu0 }
0x1ff2   :  { %1923 = vtanh.f32 %v1544_v57  ;;  %v1630_v61 = vmul.f32 -1.442695, %v1544_v57 }
0x1ff4   :  { %1925 = vpow2.f32 %v1630_v61 }
0x1ffc   :  { %v1924_v60 = vpop.eup %1923 }
0x1ffd   :  { %1554 = vrot.lane.b32.xlu1 %v1924_v60, %s1965_s23 }
0x1ffe   :  { %v1926_v62 = vpop.eup %1925 }
0x1fff   :  { %v1548_v63 = vadd.f32 1.0, %v1926_v62 }
0x2001   :  { %1927 = vrcp.f32 %v1548_v63 }
0x200b   :  { %v1928_v7 = vpop.eup %1927 }
0x200c   :  { %v1552_v5 = vmul.f32 %v1928_v7, %v1462_v50 }
0x206f   :  { %v1555_v3 = vpop.permute.xlu1 %1554 }
0x2070   :  { %v1557_v4 = vmul.f32 %v1928_v7, %v1555_v3 }
0x2072   :  { %1559 = vrot.lane.b32.xlu0 %v1557_v4, %s1966_s24 }
0x20e4   :  { %v1560_v6 = vpop.permute.xlu0 %1559 }
0x20e5   :  { %v1562_v58 = vadd.f32 %v1560_v6, %v1552_v5 }
0x20e7   :  { %1929 = vtanh.f32 %v1562_v58 }
0x20f1   :  { %v1930_v2 = vpop.eup %1929 }
0x20f2   :  { %1565 = vrot.lane.b32.xlu1 %v1930_v2, %s1967_s25 }
0x2164   :  { %v1566_v8 = vpop.permute.xlu1 %1565 }
0x2165   :  { %v1568_v10 = vmul.f32 %v1928_v7, %v1566_v8 }
0x2167   :  { %1570 = vrot.lane.b32.xlu0 %v1568_v10, %s1968_s26 }
0x21d9   :  { %v1571_v11 = vpop.permute.xlu0 %1570 }
0x21da   :  { %1579 = vst.msk [vmem:[%s2167_s1 + $0x18] sm:$0xff] %vm1166_vm5, %v1571_v11 }
0x21db   :  { %1584 = vsyncpa [#allocation3], 1 }

</bundles_post_ra>
